<compile_context>
chip_gen: v7x
topology: tpu7x:2x2x1
jax: 0.10.0
libtpu: 0.0.40
codegen_flags: <defaults>
</compile_context>

<pallas_src>
import jax
import jax.numpy as jnp
from jax import lax
from jax.experimental import pallas as pl
from jax.experimental.pallas import tpu as pltpu

N_MFCC = 13
NUM_CLASSES = 4
D_IN = 2 * N_MFCC   # 26
H1 = 128
H2 = 64

MAX_TILE = 4096     # ~4 MiB peak VMEM footprint; safe on v5e/v6e/v7x defaults


def mlp_kernel(x_ref, w1_ref, b1_ref, w2_ref, b2_ref, w3t_ref, b3_ref, o_ref):
    # x streams in as f32; cast to bf16 on the VPU (kernel is DMA/overhead bound,
    # so the cast is free and halves end-to-end HBM traffic on x).
    x = x_ref[...].astype(jnp.bfloat16)                                     # (TB, 26)

    # fc1 (+ folded bn1) + relu   -- drop1 is identity in eval mode
    h1 = jnp.dot(x, w1_ref[...], preferred_element_type=jnp.float32) + b1_ref[...]
    h1 = jnp.maximum(h1, 0.0)                                               # (TB, 128)

    # fc2 (+ folded bn2) + relu   -- drop2 is identity in eval mode
    h2 = jnp.dot(h1.astype(jnp.bfloat16), w2_ref[...],
                 preferred_element_type=jnp.float32) + b2_ref[...]
    h2 = jnp.maximum(h2, 0.0)                                               # (TB, 64)

    # fc3, emitted transposed so the output store is lane-dense:
    #   logits_t[c, b] = sum_k w3t[c, k] * h2[b, k]
    logits_t = lax.dot_general(
        w3t_ref[...], h2.astype(jnp.bfloat16),
        dimension_numbers=(((1,), (1,)), ((), ())),
        preferred_element_type=jnp.float32) + b3_ref[...]                   # (4, TB)
    o_ref[...] = logits_t.astype(o_ref.dtype)


def _round_up(n, m):
    return ((n + m - 1) // m) * m


def _pick_tile(B):
    if B <= 256:
        return B                      # single block == full array (any B allowed)
    # Multi-block: tile must be a multiple of 128 (lane-dense output last dim,
    # 8-aligned input sublanes).  Aim for >= 2 grid steps so the batch axis can
    # shard across both TensorCores on v7x; harmless on v5e/v6e.
    return min(MAX_TILE, _round_up(-(-B // 2), 128))


def mlp_forward(x, params):
    """x: (B, 26) float32 -> logits (B, 4) float32 (eval-mode forward)."""
    B = x.shape[0]
    w1, b1, w2, b2, w3t, b3 = params

    tile = _pick_tile(B)
    grid = (pl.cdiv(B, tile),)

    def resident(shape):              # same block every step -> stays in VMEM
        return pl.BlockSpec(shape, lambda i: (0, 0))

    in_specs = [
        pl.BlockSpec((tile, D_IN), lambda i: (i, 0)),      # x streamed over batch
        resident(w1.shape), resident(b1.shape),
        resident(w2.shape), resident(b2.shape),
        resident(w3t.shape), resident(b3.shape),
    ]
    # Transposed logits: last dim = batch tile -> full-width lane-dense stores.
    out_spec = pl.BlockSpec((NUM_CLASSES, tile), lambda i: (0, i))

    flops = 2 * B * (D_IN * H1 + H1 * H2 + H2 * NUM_CLASSES)
    bytes_accessed = (
        x.size * x.dtype.itemsize
        + sum(p.size * p.dtype.itemsize for p in (w1, b1, w2, b2, w3t, b3))
        + B * NUM_CLASSES * 4
    )

    out_t = pl.pallas_call(
        mlp_kernel,
        out_shape=jax.ShapeDtypeStruct((NUM_CLASSES, B), jnp.float32),
        grid=grid,
        in_specs=in_specs,
        out_specs=out_spec,
        compiler_params=pltpu.CompilerParams(
            dimension_semantics=("parallel",),
        ),
        cost_estimate=pl.CostEstimate(
            flops=flops, bytes_accessed=bytes_accessed, transcendentals=0),
    )(x, w1, b1, w2, b2, w3t, b3)

    return out_t.T            # (B, 4); tiny wrapper transpose of the logits


def make_params(key):
    """PyTorch-default-style init with BN folded into the linears.

    w1/w2 stored as (in, out) bf16; fc3 stored transposed as w3t (out, in) bf16
    to feed the rhs-transposed final matmul; biases f32 ((1, out) / (out, 1)).
    """
    ks = jax.random.split(key, 6)

    def linear(kw, kb, fan_in, fan_out):
        bound = 1.0 / jnp.sqrt(jnp.float32(fan_in))
        w = jax.random.uniform(kw, (fan_in, fan_out), jnp.float32, -bound, bound)
        b = jax.random.uniform(kb, (1, fan_out), jnp.float32, -bound, bound)
        return w, b

    w1, b1 = linear(ks[0], ks[1], D_IN, H1)
    w2, b2 = linear(ks[2], ks[3], H1, H2)
    w3, b3 = linear(ks[4], ks[5], H2, NUM_CLASSES)

    eps = 1e-5

    # BatchNorm1d default state: gamma=1, beta=0, running_mean=0, running_var=1
    def bn_fold(dim):
        gamma = jnp.ones((1, dim), jnp.float32)
        beta = jnp.zeros((1, dim), jnp.float32)
        rmean = jnp.zeros((1, dim), jnp.float32)
        rvar = jnp.ones((1, dim), jnp.float32)
        scale = gamma / jnp.sqrt(rvar + eps)
        shift = beta - rmean * scale
        return scale, shift

    s1, t1 = bn_fold(H1)
    s2, t2 = bn_fold(H2)

    # Fold BN into fc1 / fc2:  y = (x@w + b)*s + t = x@(w*s) + (b*s + t)
    w1f = (w1 * s1).astype(jnp.bfloat16)
    b1f = b1 * s1 + t1
    w2f = (w2 * s2).astype(jnp.bfloat16)
    b2f = b2 * s2 + t2

    w3t = jnp.transpose(w3).astype(jnp.bfloat16)   # (4, 64) = (out, in)
    b3t = jnp.transpose(b3)                        # (4, 1)

    return (w1f, b1f, w2f, b2f, w3t, b3t)


def reference_forward(x, params):
    """Pure-JAX reference mirroring the kernel's bf16-in / f32-accumulate math."""
    w1, b1, w2, b2, w3t, b3t = params
    xb = x.astype(jnp.bfloat16)
    h1 = jnp.maximum(jnp.dot(xb, w1, preferred_element_type=jnp.float32) + b1, 0.0)
    h2 = jnp.maximum(
        jnp.dot(h1.astype(jnp.bfloat16), w2, preferred_element_type=jnp.float32) + b2, 0.0)
    return jnp.dot(h2.astype(jnp.bfloat16), jnp.transpose(w3t),
                   preferred_element_type=jnp.float32) + jnp.transpose(b3t)


if __name__ == "__main__":
    key = jax.random.PRNGKey(0)
    k_param, k_x1, k_x2 = jax.random.split(key, 3)

    params = make_params(k_param)

    # Small batch: single block equal to the full array.
    batch = 8
    x = jax.random.normal(k_x1, (batch, D_IN), jnp.float32)
    out = jax.block_until_ready(mlp_forward(x, params))
    ref = reference_forward(x, params)
    assert out.shape == (batch, NUM_CLASSES)
    assert jnp.allclose(out, ref, atol=1e-2, rtol=1e-2)

    # Ragged batch: multi-step grid with a masked partial boundary block (no jnp.pad).
    batch2 = 300
    x2 = jax.random.normal(k_x2, (batch2, D_IN), jnp.float32)
    out2 = jax.block_until_ready(mlp_forward(x2, params))
    ref2 = reference_forward(x2, params)
    assert out2.shape == (batch2, NUM_CLASSES)
    assert jnp.allclose(out2, ref2, atol=1e-2, rtol=1e-2)

    print("KERNEL_OK")
</pallas_src>

<mosaic_0001>
module attributes {stable_mosaic.version = 11 : i64} {
  func.func @mlp_kernel(%arg0: i32, %arg1: memref<8x26xf32, #tpu.memory_space<vmem>>, %arg2: memref<26x128xbf16, #tpu.memory_space<vmem>>, %arg3: memref<1x128xf32, #tpu.memory_space<vmem>>, %arg4: memref<128x64xbf16, #tpu.memory_space<vmem>>, %arg5: memref<1x64xf32, #tpu.memory_space<vmem>>, %arg6: memref<4x64xbf16, #tpu.memory_space<vmem>>, %arg7: memref<4x1xf32, #tpu.memory_space<vmem>>, %arg8: memref<4x8xf32, #tpu.memory_space<vmem>>) attributes {dimension_semantics = [#tpu.dimension_semantics<parallel>], iteration_bounds = array<i64: 1>, scalar_prefetch = 0 : i64, scratch_operands = 0 : i64, tpu.core_type = #tpu.core_type<tc>, window_params = [{transform_indices = @transform_0, window_bounds = array<i64: 8, 26>}, {pipeline_mode = #tpu.pipeline_mode<synchronous>, transform_indices = @transform_1, window_bounds = array<i64: 26, 128>}, {pipeline_mode = #tpu.pipeline_mode<synchronous>, transform_indices = @transform_2, window_bounds = array<i64: 1, 128>}, {pipeline_mode = #tpu.pipeline_mode<synchronous>, transform_indices = @transform_3, window_bounds = array<i64: 128, 64>}, {pipeline_mode = #tpu.pipeline_mode<synchronous>, transform_indices = @transform_4, window_bounds = array<i64: 1, 64>}, {pipeline_mode = #tpu.pipeline_mode<synchronous>, transform_indices = @transform_5, window_bounds = array<i64: 4, 64>}, {pipeline_mode = #tpu.pipeline_mode<synchronous>, transform_indices = @transform_6, window_bounds = array<i64: 4, 1>}, {transform_indices = @transform_7, window_bounds = array<i64: 4, 8>}]} {
    %c0 = arith.constant 0 : index
    %c0_0 = arith.constant 0 : index
    %0 = vector.load %arg1[%c0, %c0_0] : memref<8x26xf32, #tpu.memory_space<vmem>>, vector<8x26xf32>
    %1 = arith.truncf %0 : vector<8x26xf32> to vector<8x26xbf16>
    %c0_1 = arith.constant 0 : index
    %c0_2 = arith.constant 0 : index
    %2 = vector.load %arg2[%c0_1, %c0_2] : memref<26x128xbf16, #tpu.memory_space<vmem>>, vector<26x128xbf16>
    %cst = arith.constant dense<0.000000e+00> : vector<8x128xf32>
    %3 = tpu.matmul %1, %2, %cst {dimension_numbers = #tpu.dot_dimension_numbers<[1], [0], [0], [1], [0, 0, 1, 1], [], []>} : vector<8x26xbf16>, vector<26x128xbf16>, vector<8x128xf32> -> vector<8x128xf32>
    %c0_3 = arith.constant 0 : index
    %c0_4 = arith.constant 0 : index
    %4 = vector.load %arg3[%c0_3, %c0_4] : memref<1x128xf32, #tpu.memory_space<vmem>>, vector<1x128xf32>
    %5 = vector.broadcast %4 : vector<1x128xf32> to vector<8x128xf32>
    %6 = arith.addf %3, %5 : vector<8x128xf32>
    %cst_5 = arith.constant 0.000000e+00 : f32
    %7 = vector.broadcast %cst_5 : f32 to vector<8x128xf32>
    %8 = arith.maximumf %6, %7 : vector<8x128xf32>
    %9 = arith.truncf %8 : vector<8x128xf32> to vector<8x128xbf16>
    %c0_6 = arith.constant 0 : index
    %c0_7 = arith.constant 0 : index
    %10 = vector.load %arg4[%c0_6, %c0_7] : memref<128x64xbf16, #tpu.memory_space<vmem>>, vector<128x64xbf16>
    %cst_8 = arith.constant dense<0.000000e+00> : vector<8x64xf32>
    %11 = tpu.matmul %9, %10, %cst_8 {dimension_numbers = #tpu.dot_dimension_numbers<[1], [0], [0], [1], [0, 0, 1, 1], [], []>} : vector<8x128xbf16>, vector<128x64xbf16>, vector<8x64xf32> -> vector<8x64xf32>
    %c0_9 = arith.constant 0 : index
    %c0_10 = arith.constant 0 : index
    %12 = vector.load %arg5[%c0_9, %c0_10] : memref<1x64xf32, #tpu.memory_space<vmem>>, vector<1x64xf32>
    %13 = vector.broadcast %12 : vector<1x64xf32> to vector<8x64xf32>
    %14 = arith.addf %11, %13 : vector<8x64xf32>
    %cst_11 = arith.constant 0.000000e+00 : f32
    %15 = vector.broadcast %cst_11 : f32 to vector<8x64xf32>
    %16 = arith.maximumf %14, %15 : vector<8x64xf32>
    %c0_12 = arith.constant 0 : index
    %c0_13 = arith.constant 0 : index
    %17 = vector.load %arg6[%c0_12, %c0_13] : memref<4x64xbf16, #tpu.memory_space<vmem>>, vector<4x64xbf16>
    %18 = arith.truncf %16 : vector<8x64xf32> to vector<8x64xbf16>
    %cst_14 = arith.constant dense<0.000000e+00> : vector<4x8xf32>
    %19 = tpu.matmul %17, %18, %cst_14 {dimension_numbers = #tpu.dot_dimension_numbers<[1], [1], [0], [0], [0, 0, 1, 0], [], []>} : vector<4x64xbf16>, vector<8x64xbf16>, vector<4x8xf32> -> vector<4x8xf32>
    %c0_15 = arith.constant 0 : index
    %c0_16 = arith.constant 0 : index
    %20 = vector.load %arg7[%c0_15, %c0_16] : memref<4x1xf32, #tpu.memory_space<vmem>>, vector<4x1xf32>
    %21 = vector.broadcast %20 : vector<4x1xf32> to vector<4x8xf32>
    %22 = arith.addf %19, %21 : vector<4x8xf32>
    %c0_17 = arith.constant 0 : index
    %c0_18 = arith.constant 0 : index
    %23 = vector.load %arg8[%c0_17, %c0_18] : memref<4x8xf32, #tpu.memory_space<vmem>>, vector<4x8xf32>
    tpu.vector_store %arg8[%c0_17, %c0_18], %22 {strides = array<i32>} : memref<4x8xf32, #tpu.memory_space<vmem>>, vector<4x8xf32>,
    return
  }
  func.func @transform_0(%arg0: i32) -> (i32, i32) {
    %c0_i32 = arith.constant 0 : i32
    %c0_i32_0 = arith.constant 0 : i32
    return %arg0, %c0_i32 : i32, i32
  }
  func.func @transform_1(%arg0: i32) -> (i32, i32) {
    %c0_i32 = arith.constant 0 : i32
    %c0_i32_0 = arith.constant 0 : i32
    %c0_i32_1 = arith.constant 0 : i32
    return %c0_i32, %c0_i32_0 : i32, i32
  }
  func.func @transform_2(%arg0: i32) -> (i32, i32) {
    %c0_i32 = arith.constant 0 : i32
    %c0_i32_0 = arith.constant 0 : i32
    %c0_i32_1 = arith.constant 0 : i32
    return %c0_i32, %c0_i32_0 : i32, i32
  }
  func.func @transform_3(%arg0: i32) -> (i32, i32) {
    %c0_i32 = arith.constant 0 : i32
    %c0_i32_0 = arith.constant 0 : i32
    %c0_i32_1 = arith.constant 0 : i32
    return %c0_i32, %c0_i32_0 : i32, i32
  }
  func.func @transform_4(%arg0: i32) -> (i32, i32) {
    %c0_i32 = arith.constant 0 : i32
    %c0_i32_0 = arith.constant 0 : i32
    %c0_i32_1 = arith.constant 0 : i32
    return %c0_i32, %c0_i32_0 : i32, i32
  }
  func.func @transform_5(%arg0: i32) -> (i32, i32) {
    %c0_i32 = arith.constant 0 : i32
    %c0_i32_0 = arith.constant 0 : i32
    %c0_i32_1 = arith.constant 0 : i32
    return %c0_i32, %c0_i32_0 : i32, i32
  }
  func.func @transform_6(%arg0: i32) -> (i32, i32) {
    %c0_i32 = arith.constant 0 : i32
    %c0_i32_0 = arith.constant 0 : i32
    %c0_i32_1 = arith.constant 0 : i32
    return %c0_i32, %c0_i32_0 : i32, i32
  }
  func.func @transform_7(%arg0: i32) -> (i32, i32) {
    %c0_i32 = arith.constant 0 : i32
    %c0_i32_0 = arith.constant 0 : i32
    return %c0_i32, %arg0 : i32, i32
  }
}

</mosaic_0001>

<bundles_post_ra>
// kernel: tpu_custom_call.1
= control target key start
LH: loop header
LB: loop body
LE: loop exit
PB: predicated region body
PF: predicated region fallthrough
CT: control target
= control target key end

     0   :  { %v386_v1 = vmov 0.0   ;;  %vm56_vm0 = vcmask 1044480   ;;  %vm387_vm1 = vmmov 0   ;;  %vm52_vm2 = vcmask 211968   ;;  %s487_s0 = inlined_call_operand.vmem [shape: f32[8,26], index: 0, kind: input, shape index: {}]   ;;  %s488_s1 = inlined_call_operand.vmem [shape: bf16[26,128], index: 1, kind: input, shape index: {}]   ;;  %s489_s2 = inlined_call_operand.vmem [shape: f32[1,128], index: 2, kind: input, shape index: {}]   ;;  %s490_s3 = inlined_call_operand.vmem [shape: bf16[128,64], index: 3, kind: input, shape index: {}]   ;;  %s491_s4 = inlined_call_operand.vmem [shape: f32[1,64], index: 4, kind: input, shape index: {}]   ;;  %s492_s5 = inlined_call_operand.vmem [shape: bf16[4,64], index: 5, kind: input, shape index: {}]   ;;  %s493_s6 = inlined_call_operand.vmem [shape: f32[4,1], index: 6, kind: input, shape index: {}]   ;;  %s494_s7 = inlined_call_operand.hbm [shape: f32[4,8], index: 7, kind: output, shape index: {}]  }
   0x1   :  { %v352_v0 = vld [vmem:[%s488_s1] sm:$0xff]   ;;  %313 = vmatprep.subr.bf16.mxu0 %v386_v1  ;;  %v353_v2 = vld [vmem:[%s488_s1 + $0x8] sm:$0x1f]   ;;  %321 = vmatprep.subr.bf16.mxu1 %v386_v1  ;;  %v356_v8 = vld [vmem:[%s490_s3 + $0x10] sm:$0xff]  }
   0x2   :  { %314 = vmatpush3.bf16.msra.mxu0 %v352_v0  ;;  %v28_v3 = vld [vmem:[%s487_s0] sm:$0xff]  ;;  %v58_v4 = vsel %vm56_vm0, %v353_v2, 0  ;;  %317 = vmatprep.mubr.msk.bf16.mxu0 %vm387_vm1, %v386_v1  ;;  %v355_v7 = vld [vmem:[%s490_s3 + $0x8] sm:$0xff]  }
   0x3   :  { %315 = vmatprep.subr.bf16.mxu0 %v386_v1  ;;  %v354_v5 = vld [vmem:[%s490_s3] sm:$0xff]   ;;  %337 = vmatprep.mubr.msk.bf16.mxu1 %vm387_vm1, %v386_v1  ;;  %v29_v6 = vpack.c.bf16 %v28_v3, %v28_v3 }
   0x4   :  { %322 = vmatpush3.bf16.msra.mxu1 %v354_v5 }
   0x5   :  { %323 = vmatprep.subr.bf16.mxu1 %v386_v1 }
   0x6   :  { %316 = vmatpush3.bf16.msra.mxu0 %v58_v4 }
   0x7   :  { %341 = vmatprep.subr.bf16.mxu0 %v386_v1 }
   0x8   :  { %324 = vmatpush3.bf16.msra.mxu1 %v355_v7 }
   0x9   :  { %318 = vmatmul.mubr.msk.bf16.vlgmr.msra.gmra.mrb[0].mxu0 %vm52_vm2, %v29_v6  ;;  %325 = vmatprep.subr.bf16.mxu1 %v386_v1 }
   0xa   :  { %343 = vmatprep.mubr.msk.bf16.mxu0 %vm387_vm1, %v386_v1 }
   0xb   :  { %12 = vsyncpa [#allocation3], 0  ;;  %v357_v9 = vld [vmem:[%s490_s3 + $0x18] sm:$0xff]   ;;  %v358_v10 = vld [vmem:[%s490_s3 + $0x20] sm:$0xff]   ;;  %v388_v23 = vmov 0   ;;  %vm222_vm3 = vcmask 523264  }
   0xc   :  { %326 = vmatpush3.bf16.msra.mxu1 %v356_v8  ;;  %v359_v11 = vld [vmem:[%s490_s3 + $0x28] sm:$0xff]   ;;  %v360_v12 = vld [vmem:[%s490_s3 + $0x30] sm:$0xff]   ;;  %v361_v13 = vld [vmem:[%s490_s3 + $0x38] sm:$0xff]   ;;  %351 = vset.pattern.permute.xlu0 %v388_v23  ;;  %vm269_vm4 = vcmask 60416  }
   0xd   :  { %327 = vmatprep.subr.bf16.mxu1 %v386_v1  ;;  %v285_v14 = vld [vmem:[%s489_s2] ss:$0 sm:$0xff] }
   0xe   :  { %v216_v22 = vld [vmem:[%s493_s6] sm:$0xf]  ;;  %s389_s6 = smov [#allocation2]  }
   0xf   :  { %219 = vperm.xlu0 %351, %v216_v22   ;;  %v289_v24 = vld [vmem:[%s491_s4] ss:$0 sm:$0xff]  ;;  %s277_s27 = sshll.u32 %s389_s6, 4  ;;  %s278_s27 = int_to_ptr.vmem [resolvable:$true] %s277_s27 }
  0x10   :  { %328 = vmatpush3.bf16.msra.mxu1 %v357_v9  ;;  %v214_v33 = vld [vmem:[%s492_s5] sm:$0x3]  ;;  %s362_s4 = scalar_lea.vmem %s278_s27, 64  ;;  %p367_p1 = scmp.lt.s32.totalorder %s278_s27, %s278_s27 }
  0x11   :  { %329 = vmatprep.subr.bf16.mxu1 %v386_v1  ;;  %p363_p0 = scmp.ne.s32.totalorder %s278_s27, %s362_s4  ;;  %p368_p2 = scmp.lt.s32.totalorder %s362_s4, %s362_s4 }
  0x13   :  { %p369_p3 = por %p368_p2, %p367_p1 }
  0x14   :  { %330 = vmatpush3.bf16.msra.mxu1 %v358_v10 }
  0x15   :  { %331 = vmatprep.subr.bf16.mxu1 %v386_v1  ;;  %p370_p4 = pnand %p369_p3, %p363_p0 }
  0x18   :  { %332 = vmatpush3.bf16.msra.mxu1 %v359_v11 }
  0x19   :  { %333 = vmatprep.subr.bf16.mxu1 %v386_v1 }
  0x1c   :  { %334 = vmatpush3.bf16.msra.mxu1 %v360_v12 }
  0x1d   :  { %335 = vmatprep.subr.bf16.mxu1 %v386_v1 }
  0x20   :  { %336 = vmatpush3.bf16.msra.mxu1 %v361_v13 }
  0x8e   :  { %v220_v34 = vpop.permute.xlu0 %219 }
  0xdc   :  { %v94_v15 = vpop.f32.mrb[0].mxu0 }
  0xdd   :  { %v95_v16 = vadd.f32 %v285_v14, %v94_v15  ;;  %v319_v17 = vpop.f32.mrb[1].mxu0 }
  0xde   :  { %v97_v18 = vpop.f32.mrb[2].mxu0 }
  0xdf   :  { %v100_v19 = vmax.f32 %v95_v16, 0.0  ;;  %v320_v20 = vpop.f32.mrb[3].mxu0 }
  0xe1   :  { %v101_v21 = vpack.c.bf16 %v100_v19, %v100_v19 }
  0xe3   :  { %338 = vmatmul.mubr.bf16.vlgmr.msra.gmra.mrb[0].mxu1 %v101_v21 }
 0x1b6   :  { %v207_v25 = vpop.f32.mrb[0].mxu1 }
 0x1b7   :  { %v208_v26 = vadd.f32 %v289_v24, %v207_v25  ;;  %v339_v27 = vpop.f32.mrb[1].mxu1 }
 0x1b8   :  { %v210_v28 = vpop.f32.mrb[2].mxu1 }
 0x1b9   :  { %v213_v29 = vmax.f32 %v208_v26, 0.0  ;;  %v340_v30 = vpop.f32.mrb[3].mxu1 }
 0x1bb   :  { %v215_v31 = vpack.c.bf16 %v213_v29, %v213_v29 }
 0x1bd   :  { %v227_v32 = vsel %vm222_vm3, %v215_v31, 0 }
 0x1be   :  { %342 = vmatpush3.bf16.xpose.msra.mxu0 %v227_v32 }
 0x1c5   :  { %344 = vmatmul.mubr.msk.bf16.vlgmr.msra.gmra.mrb[4].mxu0 %vm222_vm3, %v214_v33 }
 0x298   :  { %v263_v35 = vpop.f32.mrb[4].mxu0 }
 0x299   :  { %v264_v36 = vadd.f32 %v263_v35, %v220_v34  ;;  %v345_v37 = vpop.f32.mrb[5].mxu0 }
 0x29a   :  { %v266_v38 = vpop.f32.mrb[6].mxu0 }
 0x29b   :  { %v346_v39 = vpop.f32.mrb[7].mxu0  ;;  %270 = vst.msk [vmem:[#allocation2] sm:$0xf] %vm269_vm4, %v264_v36 }
 0x29c   :  { %373 = shalt.err (!%p370_p4)
}
 0x29d   :  { %s374_s29 = scalar_lea.hbm %s494_s7, 64 }
 0x29e   :  { %p375_p5 = scmp.ne.s32.totalorder %s494_s7, %s374_s29  ;;  %p378_p6 = scmp.lt.u32.totalorder %s374_s29, %s494_s7 }
 0x2a0   :  { %p380_p7 = pnand %p378_p6, %p375_p5 }
 0x2a2   :  { %383 = shalt.err (!%p380_p7)
}
 0x2a3   :  { %280 = dma.vmem_to_hbm [thread:$0]  %s278_s27, 64, %s494_s7, [#allocation3]  }
 0x2a4   :  { %384 = dma.done.wait [#allocation3], 64  }
 0x2a5   :  { %385 = vsyncadd [#allocation3], 4294967232 }
 0x2a6   :  { %284 = vsyncpa [#allocation3], 1 }

</bundles_post_ra>
